<compile_context>
chip_gen: v6e
topology: v6e:2x2x1
jax: 0.10.0
libtpu: 0.0.40
codegen_flags: <defaults>
</compile_context>

<pallas_src>
import numpy as np
import jax
import jax.numpy as jnp
from jax import lax
from jax.experimental import pallas as pl
from jax.experimental.pallas import tpu as pltpu


# ----------------------------------------------------------------------------
# In-kernel helpers
# ----------------------------------------------------------------------------
def _slide_max(a, axis, ks, st):
    """VALID max-pool of `a` along `axis`, window `ks`, stride `st`.

    k stride-1 taps (cheap shifts, VPU max) + one final strided subsample.
    """
    dim = a.shape[axis]

    def sl(arr, off, length, step=1):
        idx = [slice(None)] * arr.ndim
        idx[axis] = slice(off, off + (length - 1) * step + 1, step)
        return arr[tuple(idx)]

    stride1_len = dim - ks + 1
    t = sl(a, 0, stride1_len)
    for v in range(1, ks):
        t = jnp.maximum(t, sl(a, v, stride1_len))
    if st > 1:
        out_len = (dim - ks) // st + 1
        t = sl(t, 0, out_len, st)
    return t


# ----------------------------------------------------------------------------
# Pallas kernel: all scale bands fused, grid over (batch, channel tiles)
# ----------------------------------------------------------------------------
def make_c_kernel(band_params, num_scales_pooled, scale_stride,
                  H, W, target_h, target_w, channels_last):
    """band_params: list of (kernel_size, stride) -- all static Python ints."""
    h_axis, w_axis = (0, 1) if channels_last else (1, 2)

    def kernel(x_ref, o_ref):
        # channels_last:  x_ref (1, S, H, W, Ct)   o_ref (1, S_out, th, tw, Ct)
        # channels_first: x_ref (1, S, Ct, H, W)   o_ref (1, S_out, Ct, th, tw)
        ct = o_ref.shape[-1] if channels_last else o_ref.shape[2]

        def zeros(h, w):
            shp = (h, w, ct) if channels_last else (ct, h, w)
            return jnp.zeros(shp, o_ref.dtype)

        for band, (ks, st) in enumerate(band_params):
            # ---- 1. elementwise max over the scale group (VPU) --------------
            base = band * scale_stride
            m = x_ref[0, base]
            for j in range(1, num_scales_pooled):
                m = jnp.maximum(m, x_ref[0, base + j])

            # ---- 2. separable ks x ks VALID max pool -------------------------
            p = _slide_max(m, w_axis, ks, st)
            p = _slide_max(p, h_axis, ks, st)

            # ---- 3. centered zero-pad: 4 border strips + 1 interior store ---
            out_h = (H - ks) // st + 1
            out_w = (W - ks) // st + 1
            pad_t = (target_h - out_h) // 2
            pad_b = target_h - out_h - pad_t
            pad_l = (target_w - out_w) // 2
            pad_r = target_w - out_w - pad_l

            def store(h_sl, w_sl, v, band=band):
                if channels_last:
                    o_ref[0, band, h_sl, w_sl, :] = v
                else:
                    o_ref[0, band, :, h_sl, w_sl] = v

            if pad_t > 0:
                store(slice(0, pad_t), slice(None), zeros(pad_t, target_w))
            if pad_b > 0:
                store(slice(pad_t + out_h, target_h), slice(None),
                      zeros(pad_b, target_w))
            if pad_l > 0:
                store(slice(pad_t, pad_t + out_h), slice(0, pad_l),
                      zeros(out_h, pad_l))
            if pad_r > 0:
                store(slice(pad_t, pad_t + out_h),
                      slice(pad_l + out_w, target_w), zeros(out_h, pad_r))
            store(slice(pad_t, pad_t + out_h),
                  slice(pad_l, pad_l + out_w), p)

    return kernel


# ----------------------------------------------------------------------------
# Wrapper: mirrors C.__init__ parameter handling + forward
# ----------------------------------------------------------------------------
def c_forward(x, *, sp_kernel_size, sp_stride_factor=None, n_in_sbands=None,
              num_scales_pooled=2, scale_stride=2, image_subsample_factor=1,
              internal_layout_out=False):
    """JAX/Pallas equivalent of C.forward.  x: (B, C, H, W, S) array."""
    if x.ndim != 5:
        raise ValueError('expecting 5D input: BxCxHxWxS')
    B, C, H, W, S = x.shape
    if n_in_sbands is None:
        n_in_sbands = S
    assert S == n_in_sbands

    n_out_sbands = int((n_in_sbands - num_scales_pooled) / scale_stride + 1)
    if isinstance(sp_kernel_size, int):
        sp_kernel_size = [sp_kernel_size] * n_out_sbands
    if len(sp_kernel_size) != n_out_sbands:
        raise ValueError('wrong number of sp_kernel_sizes provided')
    if sp_stride_factor is None:
        sp_stride = [1] * n_out_sbands
    else:
        sp_stride = [int(np.ceil(sp_stride_factor * k)) for k in sp_kernel_size]

    target_h = int(H / image_subsample_factor)
    target_w = int(W / image_subsample_factor)

    band_params = list(zip(sp_kernel_size, sp_stride))
    for ks, st in band_params:
        # TODO(synk): the kernel_size < 0 branch of the reference (un-padded
        # global max-pool) is not implemented; default configs never hit it.
        assert ks >= 0, "negative sp_kernel_size (global pool) not supported"
        assert ks <= H and ks <= W, "pool kernel larger than the input"
        out_h = (H - ks) // st + 1
        out_w = (W - ks) // st + 1
        assert out_h <= target_h and out_w <= target_w, (
            "pooled map larger than pad target (image_subsample_factor too big)")

    dsize = jnp.dtype(x.dtype).itemsize

    # ---- layout choice (lane density) --------------------------------------
    channels_last = C >= 128

    # ---- channel tile: keep double-buffered (in + out) blocks <= ~10 MiB ----
    per_ch_in = S * H * W * dsize
    per_ch_out = n_out_sbands * target_h * target_w * dsize
    budget = 10 * 1024 * 1024
    max_ct = max(1, budget // (2 * (per_ch_in + per_ch_out)))
    if channels_last:
        c_tile = 128 * max(1, min(max_ct // 128, (C + 127) // 128))
    else:
        c_tile = int(max(1, min(max_ct, C)))
        while C % c_tile != 0:          # avoid a partial trailing block
            c_tile -= 1
    n_c_tiles = pl.cdiv(C, c_tile)

    if channels_last:
        x_t = jnp.transpose(x, (0, 4, 2, 3, 1))            # (B, S, H, W, C)
        in_block = (1, S, H, W, c_tile)
        in_map = lambda b, c: (b, 0, 0, 0, c)
        out_shape_int = (B, n_out_sbands, target_h, target_w, C)
        out_block = (1, n_out_sbands, target_h, target_w, c_tile)
        out_map = lambda b, c: (b, 0, 0, 0, c)
    else:
        x_t = jnp.transpose(x, (0, 4, 1, 2, 3))            # (B, S, C, H, W)
        in_block = (1, S, c_tile, H, W)
        in_map = lambda b, c: (b, 0, c, 0, 0)
        out_shape_int = (B, n_out_sbands, C, target_h, target_w)
        out_block = (1, n_out_sbands, c_tile, target_h, target_w)
        out_map = lambda b, c: (b, 0, c, 0, 0)

    # ---- advisory cost estimate ---------------------------------------------
    flops = 0
    for ks, st in band_params:
        oh = (H - ks) // st + 1
        ow = (W - ks) // st + 1
        flops += (num_scales_pooled - 1) * C * H * W            # scale max
        flops += (ks - 1) * C * (H * (W - ks + 1) + oh * ow)    # separable pool
    flops *= B
    bytes_accessed = (x.size * dsize
                      + B * n_out_sbands * C * target_h * target_w * dsize)

    out = pl.pallas_call(
        make_c_kernel(band_params, num_scales_pooled, scale_stride,
                      H, W, target_h, target_w, channels_last),
        out_shape=jax.ShapeDtypeStruct(out_shape_int, x.dtype),
        grid=(B, n_c_tiles),
        in_specs=[pl.BlockSpec(in_block, in_map)],
        out_specs=pl.BlockSpec(out_block, out_map),
        compiler_params=pltpu.CompilerParams(
            dimension_semantics=("parallel", "parallel"),
            vmem_limit_bytes=32 * 1024 * 1024),
        cost_estimate=pl.CostEstimate(
            flops=int(flops), transcendentals=0,
            bytes_accessed=int(bytes_accessed)),
    )(x_t)

    if internal_layout_out:
        # (B, S_out, th, tw, C) if channels_last else (B, S_out, C, th, tw)
        return out
    if channels_last:
        return jnp.transpose(out, (0, 4, 2, 3, 1))          # (B, C, th, tw, S_out)
    return jnp.transpose(out, (0, 2, 3, 4, 1))              # (B, C, th, tw, S_out)


# ----------------------------------------------------------------------------
# Pure-JAX reference (mirrors the PyTorch forward) for correctness checks
# ----------------------------------------------------------------------------
def pad_to_size_jax(a, size):
    total_pad_h = size[0] - a.shape[-2]
    pad_top = total_pad_h // 2
    pad_bottom = total_pad_h - pad_top
    total_pad_w = size[1] - a.shape[-1]
    pad_left = total_pad_w // 2
    pad_right = total_pad_w - pad_left
    return jnp.pad(a, ((0, 0), (0, 0),
                       (pad_top, pad_bottom), (pad_left, pad_right)))


def c_reference(x, *, sp_kernel_size, sp_stride_factor=None,
                num_scales_pooled=2, scale_stride=2, image_subsample_factor=1):
    B, C, H, W, S = x.shape
    n_out = int((S - num_scales_pooled) / scale_stride + 1)
    if isinstance(sp_kernel_size, int):
        sp_kernel_size = [sp_kernel_size] * n_out
    if sp_stride_factor is None:
        sp_stride = [1] * n_out
    else:
        sp_stride = [int(np.ceil(sp_stride_factor * k)) for k in sp_kernel_size]

    groups = [x[..., i::scale_stride][..., 0:n_out]
              for i in range(num_scales_pooled)]
    y = jnp.stack(groups, axis=5).max(axis=5)               # (B, C, H, W, n_out)

    th = int(H / image_subsample_factor)
    tw = int(W / image_subsample_factor)
    maps = []
    for i, (ks, st) in enumerate(zip(sp_kernel_size, sp_stride)):
        m = y[..., i]                                        # (B, C, H, W)
        pooled = lax.reduce_window(m, -jnp.inf, lax.max,
                                   (1, 1, ks, ks), (1, 1, st, st), 'VALID')
        maps.append(pad_to_size_jax(pooled, (th, tw)))
    return jnp.stack(maps, axis=4)


if __name__ == "__main__":
    # --- test 1: small HMAX-like config (channels-first kernel path) ---------
    B, Cch, H, W, S = 2, 4, 16, 16, 4          # -> n_out_sbands = 2
    sp_kernel_size = [4, 6]
    x1 = jax.random.normal(jax.random.PRNGKey(0), (B, Cch, H, W, S),
                           dtype=jnp.float32)
    out1 = jax.block_until_ready(
        c_forward(x1, sp_kernel_size=sp_kernel_size, sp_stride_factor=None,
                  n_in_sbands=S, num_scales_pooled=2, scale_stride=2,
                  image_subsample_factor=1))
    assert out1.shape == (B, Cch, H, W, 2), out1.shape
    ref1 = jax.block_until_ready(
        c_reference(x1, sp_kernel_size=sp_kernel_size, sp_stride_factor=None,
                    num_scales_pooled=2, scale_stride=2))
    np.testing.assert_allclose(np.asarray(out1), np.asarray(ref1),
                               rtol=1e-6, atol=1e-6)

    # --- test 2: wide-channel config (lane-dense channels-last path) with
    #             overlapping scale groups and strided spatial pooling --------
    B2, C2, H2, W2, S2 = 1, 128, 16, 16, 3     # -> n_out_sbands = 2
    sp_kernel_size2 = [4, 6]
    x2 = jax.random.normal(jax.random.PRNGKey(0), (B2, C2, H2, W2, S2),
                           dtype=jnp.float32)
    out2 = jax.block_until_ready(
        c_forward(x2, sp_kernel_size=sp_kernel_size2, sp_stride_factor=0.5,
                  n_in_sbands=S2, num_scales_pooled=2, scale_stride=1,
                  image_subsample_factor=1))
    assert out2.shape == (B2, C2, H2, W2, 2), out2.shape
    ref2 = jax.block_until_ready(
        c_reference(x2, sp_kernel_size=sp_kernel_size2, sp_stride_factor=0.5,
                    num_scales_pooled=2, scale_stride=1))
    np.testing.assert_allclose(np.asarray(out2), np.asarray(ref2),
                               rtol=1e-6, atol=1e-6)

    print("KERNEL_OK")
</pallas_src>

<mosaic_0001>
module attributes {stable_mosaic.version = 11 : i64} {
  func.func @kernel(%arg0: i32, %arg1: i32, %arg2: memref<1x4x4x16x16xf32, #tpu.memory_space<vmem>>, %arg3: memref<1x2x4x16x16xf32, #tpu.memory_space<vmem>>) attributes {dimension_semantics = [#tpu.dimension_semantics<parallel>, #tpu.dimension_semantics<parallel>], iteration_bounds = array<i64: 2, 1>, scalar_prefetch = 0 : i64, scratch_operands = 0 : i64, tpu.core_type = #tpu.core_type<tc>, window_params = [{transform_indices = @transform_0, window_bounds = array<i64: 1, 4, 4, 16, 16>}, {transform_indices = @transform_1, window_bounds = array<i64: 1, 2, 4, 16, 16>}]} {
    %c0 = arith.constant 0 : index
    %c0_0 = arith.constant 0 : index
    %c0_1 = arith.constant 0 : index
    %c0_2 = arith.constant 0 : index
    %c0_3 = arith.constant 0 : index
    %0 = vector.load %arg2[%c0, %c0_0, %c0_1, %c0_2, %c0_3] : memref<1x4x4x16x16xf32, #tpu.memory_space<vmem>>, vector<1x1x4x16x16xf32>
    %1 = vector.shape_cast %0 : vector<1x1x4x16x16xf32> to vector<4x16x16xf32>
    %c0_4 = arith.constant 0 : index
    %c1 = arith.constant 1 : index
    %c0_5 = arith.constant 0 : index
    %c0_6 = arith.constant 0 : index
    %c0_7 = arith.constant 0 : index
    %2 = vector.load %arg2[%c0_4, %c1, %c0_5, %c0_6, %c0_7] : memref<1x4x4x16x16xf32, #tpu.memory_space<vmem>>, vector<1x1x4x16x16xf32>
    %3 = vector.shape_cast %2 : vector<1x1x4x16x16xf32> to vector<4x16x16xf32>
    %4 = arith.maximumf %1, %3 : vector<4x16x16xf32>
    %5 = vector.extract_strided_slice %4 {offsets = [0, 0, 0], sizes = [4, 16, 13], strides = [1, 1, 1]} : vector<4x16x16xf32> to vector<4x16x13xf32>
    %6 = vector.extract_strided_slice %4 {offsets = [0, 0, 1], sizes = [4, 16, 13], strides = [1, 1, 1]} : vector<4x16x16xf32> to vector<4x16x13xf32>
    %7 = arith.maximumf %5, %6 : vector<4x16x13xf32>
    %8 = vector.extract_strided_slice %4 {offsets = [0, 0, 2], sizes = [4, 16, 13], strides = [1, 1, 1]} : vector<4x16x16xf32> to vector<4x16x13xf32>
    %9 = arith.maximumf %7, %8 : vector<4x16x13xf32>
    %10 = vector.extract_strided_slice %4 {offsets = [0, 0, 3], sizes = [4, 16, 13], strides = [1, 1, 1]} : vector<4x16x16xf32> to vector<4x16x13xf32>
    %11 = arith.maximumf %9, %10 : vector<4x16x13xf32>
    %12 = vector.extract_strided_slice %11 {offsets = [0, 0, 0], sizes = [4, 13, 13], strides = [1, 1, 1]} : vector<4x16x13xf32> to vector<4x13x13xf32>
    %13 = vector.extract_strided_slice %11 {offsets = [0, 1, 0], sizes = [4, 13, 13], strides = [1, 1, 1]} : vector<4x16x13xf32> to vector<4x13x13xf32>
    %14 = arith.maximumf %12, %13 : vector<4x13x13xf32>
    %15 = vector.extract_strided_slice %11 {offsets = [0, 2, 0], sizes = [4, 13, 13], strides = [1, 1, 1]} : vector<4x16x13xf32> to vector<4x13x13xf32>
    %16 = arith.maximumf %14, %15 : vector<4x13x13xf32>
    %17 = vector.extract_strided_slice %11 {offsets = [0, 3, 0], sizes = [4, 13, 13], strides = [1, 1, 1]} : vector<4x16x13xf32> to vector<4x13x13xf32>
    %18 = arith.maximumf %16, %17 : vector<4x13x13xf32>
    %cst = arith.constant 0.000000e+00 : f32
    %19 = vector.broadcast %cst : f32 to vector<4x1x16xf32>
    %c0_8 = arith.constant 0 : index
    %c0_9 = arith.constant 0 : index
    %c0_10 = arith.constant 0 : index
    %c0_11 = arith.constant 0 : index
    %c0_12 = arith.constant 0 : index
    %20 = vector.load %arg3[%c0_8, %c0_9, %c0_10, %c0_11, %c0_12] : memref<1x2x4x16x16xf32, #tpu.memory_space<vmem>>, vector<1x1x4x1x16xf32>
    %21 = vector.shape_cast %20 : vector<1x1x4x1x16xf32> to vector<4x1x16xf32>
    %22 = vector.shape_cast %19 : vector<4x1x16xf32> to vector<1x1x4x1x16xf32>
    tpu.vector_store %arg3[%c0_8, %c0_9, %c0_10, %c0_11, %c0_12], %22 {strides = array<i32>} : memref<1x2x4x16x16xf32, #tpu.memory_space<vmem>>, vector<1x1x4x1x16xf32>,
    %cst_13 = arith.constant 0.000000e+00 : f32
    %23 = vector.broadcast %cst_13 : f32 to vector<4x2x16xf32>
    %c0_14 = arith.constant 0 : index
    %c0_15 = arith.constant 0 : index
    %c0_16 = arith.constant 0 : index
    %c14 = arith.constant 14 : index
    %c0_17 = arith.constant 0 : index
    %24 = vector.load %arg3[%c0_14, %c0_15, %c0_16, %c14, %c0_17] : memref<1x2x4x16x16xf32, #tpu.memory_space<vmem>>, vector<1x1x4x2x16xf32>
    %25 = vector.shape_cast %24 : vector<1x1x4x2x16xf32> to vector<4x2x16xf32>
    %26 = vector.shape_cast %23 : vector<4x2x16xf32> to vector<1x1x4x2x16xf32>
    tpu.vector_store %arg3[%c0_14, %c0_15, %c0_16, %c14, %c0_17], %26 {strides = array<i32>} : memref<1x2x4x16x16xf32, #tpu.memory_space<vmem>>, vector<1x1x4x2x16xf32>,
    %cst_18 = arith.constant 0.000000e+00 : f32
    %27 = vector.broadcast %cst_18 : f32 to vector<4x13x1xf32>
    %c0_19 = arith.constant 0 : index
    %c0_20 = arith.constant 0 : index
    %c0_21 = arith.constant 0 : index
    %c1_22 = arith.constant 1 : index
    %c0_23 = arith.constant 0 : index
    %28 = vector.load %arg3[%c0_19, %c0_20, %c0_21, %c1_22, %c0_23] : memref<1x2x4x16x16xf32, #tpu.memory_space<vmem>>, vector<1x1x4x13x1xf32>
    %29 = vector.shape_cast %28 : vector<1x1x4x13x1xf32> to vector<4x13x1xf32>
    %30 = vector.shape_cast %27 : vector<4x13x1xf32> to vector<1x1x4x13x1xf32>
    tpu.vector_store %arg3[%c0_19, %c0_20, %c0_21, %c1_22, %c0_23], %30 {strides = array<i32>} : memref<1x2x4x16x16xf32, #tpu.memory_space<vmem>>, vector<1x1x4x13x1xf32>,
    %cst_24 = arith.constant 0.000000e+00 : f32
    %31 = vector.broadcast %cst_24 : f32 to vector<4x13x2xf32>
    %c0_25 = arith.constant 0 : index
    %c0_26 = arith.constant 0 : index
    %c0_27 = arith.constant 0 : index
    %c1_28 = arith.constant 1 : index
    %c14_29 = arith.constant 14 : index
    %32 = vector.load %arg3[%c0_25, %c0_26, %c0_27, %c1_28, %c14_29] : memref<1x2x4x16x16xf32, #tpu.memory_space<vmem>>, vector<1x1x4x13x2xf32>
    %33 = vector.shape_cast %32 : vector<1x1x4x13x2xf32> to vector<4x13x2xf32>
    %34 = vector.shape_cast %31 : vector<4x13x2xf32> to vector<1x1x4x13x2xf32>
    tpu.vector_store %arg3[%c0_25, %c0_26, %c0_27, %c1_28, %c14_29], %34 {strides = array<i32>} : memref<1x2x4x16x16xf32, #tpu.memory_space<vmem>>, vector<1x1x4x13x2xf32>,
    %c0_30 = arith.constant 0 : index
    %c0_31 = arith.constant 0 : index
    %c0_32 = arith.constant 0 : index
    %c1_33 = arith.constant 1 : index
    %c1_34 = arith.constant 1 : index
    %35 = vector.load %arg3[%c0_30, %c0_31, %c0_32, %c1_33, %c1_34] : memref<1x2x4x16x16xf32, #tpu.memory_space<vmem>>, vector<1x1x4x13x13xf32>
    %36 = vector.shape_cast %35 : vector<1x1x4x13x13xf32> to vector<4x13x13xf32>
    %37 = vector.shape_cast %18 : vector<4x13x13xf32> to vector<1x1x4x13x13xf32>
    tpu.vector_store %arg3[%c0_30, %c0_31, %c0_32, %c1_33, %c1_34], %37 {strides = array<i32>} : memref<1x2x4x16x16xf32, #tpu.memory_space<vmem>>, vector<1x1x4x13x13xf32>,
    %c0_35 = arith.constant 0 : index
    %c2 = arith.constant 2 : index
    %c0_36 = arith.constant 0 : index
    %c0_37 = arith.constant 0 : index
    %c0_38 = arith.constant 0 : index
    %38 = vector.load %arg2[%c0_35, %c2, %c0_36, %c0_37, %c0_38] : memref<1x4x4x16x16xf32, #tpu.memory_space<vmem>>, vector<1x1x4x16x16xf32>
    %39 = vector.shape_cast %38 : vector<1x1x4x16x16xf32> to vector<4x16x16xf32>
    %c0_39 = arith.constant 0 : index
    %c3 = arith.constant 3 : index
    %c0_40 = arith.constant 0 : index
    %c0_41 = arith.constant 0 : index
    %c0_42 = arith.constant 0 : index
    %40 = vector.load %arg2[%c0_39, %c3, %c0_40, %c0_41, %c0_42] : memref<1x4x4x16x16xf32, #tpu.memory_space<vmem>>, vector<1x1x4x16x16xf32>
    %41 = vector.shape_cast %40 : vector<1x1x4x16x16xf32> to vector<4x16x16xf32>
    %42 = arith.maximumf %39, %41 : vector<4x16x16xf32>
    %43 = vector.extract_strided_slice %42 {offsets = [0, 0, 0], sizes = [4, 16, 11], strides = [1, 1, 1]} : vector<4x16x16xf32> to vector<4x16x11xf32>
    %44 = vector.extract_strided_slice %42 {offsets = [0, 0, 1], sizes = [4, 16, 11], strides = [1, 1, 1]} : vector<4x16x16xf32> to vector<4x16x11xf32>
    %45 = arith.maximumf %43, %44 : vector<4x16x11xf32>
    %46 = vector.extract_strided_slice %42 {offsets = [0, 0, 2], sizes = [4, 16, 11], strides = [1, 1, 1]} : vector<4x16x16xf32> to vector<4x16x11xf32>
    %47 = arith.maximumf %45, %46 : vector<4x16x11xf32>
    %48 = vector.extract_strided_slice %42 {offsets = [0, 0, 3], sizes = [4, 16, 11], strides = [1, 1, 1]} : vector<4x16x16xf32> to vector<4x16x11xf32>
    %49 = arith.maximumf %47, %48 : vector<4x16x11xf32>
    %50 = vector.extract_strided_slice %42 {offsets = [0, 0, 4], sizes = [4, 16, 11], strides = [1, 1, 1]} : vector<4x16x16xf32> to vector<4x16x11xf32>
    %51 = arith.maximumf %49, %50 : vector<4x16x11xf32>
    %52 = vector.extract_strided_slice %42 {offsets = [0, 0, 5], sizes = [4, 16, 11], strides = [1, 1, 1]} : vector<4x16x16xf32> to vector<4x16x11xf32>
    %53 = arith.maximumf %51, %52 : vector<4x16x11xf32>
    %54 = vector.extract_strided_slice %53 {offsets = [0, 0, 0], sizes = [4, 11, 11], strides = [1, 1, 1]} : vector<4x16x11xf32> to vector<4x11x11xf32>
    %55 = vector.extract_strided_slice %53 {offsets = [0, 1, 0], sizes = [4, 11, 11], strides = [1, 1, 1]} : vector<4x16x11xf32> to vector<4x11x11xf32>
    %56 = arith.maximumf %54, %55 : vector<4x11x11xf32>
    %57 = vector.extract_strided_slice %53 {offsets = [0, 2, 0], sizes = [4, 11, 11], strides = [1, 1, 1]} : vector<4x16x11xf32> to vector<4x11x11xf32>
    %58 = arith.maximumf %56, %57 : vector<4x11x11xf32>
    %59 = vector.extract_strided_slice %53 {offsets = [0, 3, 0], sizes = [4, 11, 11], strides = [1, 1, 1]} : vector<4x16x11xf32> to vector<4x11x11xf32>
    %60 = arith.maximumf %58, %59 : vector<4x11x11xf32>
    %61 = vector.extract_strided_slice %53 {offsets = [0, 4, 0], sizes = [4, 11, 11], strides = [1, 1, 1]} : vector<4x16x11xf32> to vector<4x11x11xf32>
    %62 = arith.maximumf %60, %61 : vector<4x11x11xf32>
    %63 = vector.extract_strided_slice %53 {offsets = [0, 5, 0], sizes = [4, 11, 11], strides = [1, 1, 1]} : vector<4x16x11xf32> to vector<4x11x11xf32>
    %64 = arith.maximumf %62, %63 : vector<4x11x11xf32>
    %cst_43 = arith.constant 0.000000e+00 : f32
    %65 = vector.broadcast %cst_43 : f32 to vector<4x2x16xf32>
    %c0_44 = arith.constant 0 : index
    %c1_45 = arith.constant 1 : index
    %c0_46 = arith.constant 0 : index
    %c0_47 = arith.constant 0 : index
    %c0_48 = arith.constant 0 : index
    %66 = vector.load %arg3[%c0_44, %c1_45, %c0_46, %c0_47, %c0_48] : memref<1x2x4x16x16xf32, #tpu.memory_space<vmem>>, vector<1x1x4x2x16xf32>
    %67 = vector.shape_cast %66 : vector<1x1x4x2x16xf32> to vector<4x2x16xf32>
    %68 = vector.shape_cast %65 : vector<4x2x16xf32> to vector<1x1x4x2x16xf32>
    tpu.vector_store %arg3[%c0_44, %c1_45, %c0_46, %c0_47, %c0_48], %68 {strides = array<i32>} : memref<1x2x4x16x16xf32, #tpu.memory_space<vmem>>, vector<1x1x4x2x16xf32>,
    %cst_49 = arith.constant 0.000000e+00 : f32
    %69 = vector.broadcast %cst_49 : f32 to vector<4x3x16xf32>
    %c0_50 = arith.constant 0 : index
    %c1_51 = arith.constant 1 : index
    %c0_52 = arith.constant 0 : index
    %c13 = arith.constant 13 : index
    %c0_53 = arith.constant 0 : index
    %70 = vector.load %arg3[%c0_50, %c1_51, %c0_52, %c13, %c0_53] : memref<1x2x4x16x16xf32, #tpu.memory_space<vmem>>, vector<1x1x4x3x16xf32>
    %71 = vector.shape_cast %70 : vector<1x1x4x3x16xf32> to vector<4x3x16xf32>
    %72 = vector.shape_cast %69 : vector<4x3x16xf32> to vector<1x1x4x3x16xf32>
    tpu.vector_store %arg3[%c0_50, %c1_51, %c0_52, %c13, %c0_53], %72 {strides = array<i32>} : memref<1x2x4x16x16xf32, #tpu.memory_space<vmem>>, vector<1x1x4x3x16xf32>,
    %cst_54 = arith.constant 0.000000e+00 : f32
    %73 = vector.broadcast %cst_54 : f32 to vector<4x11x2xf32>
    %c0_55 = arith.constant 0 : index
    %c1_56 = arith.constant 1 : index
    %c0_57 = arith.constant 0 : index
    %c2_58 = arith.constant 2 : index
    %c0_59 = arith.constant 0 : index
    %74 = vector.load %arg3[%c0_55, %c1_56, %c0_57, %c2_58, %c0_59] : memref<1x2x4x16x16xf32, #tpu.memory_space<vmem>>, vector<1x1x4x11x2xf32>
    %75 = vector.shape_cast %74 : vector<1x1x4x11x2xf32> to vector<4x11x2xf32>
    %76 = vector.shape_cast %73 : vector<4x11x2xf32> to vector<1x1x4x11x2xf32>
    tpu.vector_store %arg3[%c0_55, %c1_56, %c0_57, %c2_58, %c0_59], %76 {strides = array<i32>} : memref<1x2x4x16x16xf32, #tpu.memory_space<vmem>>, vector<1x1x4x11x2xf32>,
    %cst_60 = arith.constant 0.000000e+00 : f32
    %77 = vector.broadcast %cst_60 : f32 to vector<4x11x3xf32>
    %c0_61 = arith.constant 0 : index
    %c1_62 = arith.constant 1 : index
    %c0_63 = arith.constant 0 : index
    %c2_64 = arith.constant 2 : index
    %c13_65 = arith.constant 13 : index
    %78 = vector.load %arg3[%c0_61, %c1_62, %c0_63, %c2_64, %c13_65] : memref<1x2x4x16x16xf32, #tpu.memory_space<vmem>>, vector<1x1x4x11x3xf32>
    %79 = vector.shape_cast %78 : vector<1x1x4x11x3xf32> to vector<4x11x3xf32>
    %80 = vector.shape_cast %77 : vector<4x11x3xf32> to vector<1x1x4x11x3xf32>
    tpu.vector_store %arg3[%c0_61, %c1_62, %c0_63, %c2_64, %c13_65], %80 {strides = array<i32>} : memref<1x2x4x16x16xf32, #tpu.memory_space<vmem>>, vector<1x1x4x11x3xf32>,
    %c0_66 = arith.constant 0 : index
    %c1_67 = arith.constant 1 : index
    %c0_68 = arith.constant 0 : index
    %c2_69 = arith.constant 2 : index
    %c2_70 = arith.constant 2 : index
    %81 = vector.load %arg3[%c0_66, %c1_67, %c0_68, %c2_69, %c2_70] : memref<1x2x4x16x16xf32, #tpu.memory_space<vmem>>, vector<1x1x4x11x11xf32>
    %82 = vector.shape_cast %81 : vector<1x1x4x11x11xf32> to vector<4x11x11xf32>
    %83 = vector.shape_cast %64 : vector<4x11x11xf32> to vector<1x1x4x11x11xf32>
    tpu.vector_store %arg3[%c0_66, %c1_67, %c0_68, %c2_69, %c2_70], %83 {strides = array<i32>} : memref<1x2x4x16x16xf32, #tpu.memory_space<vmem>>, vector<1x1x4x11x11xf32>,
    return
  }
  func.func @transform_0(%arg0: i32, %arg1: i32) -> (i32, i32, i32, i32, i32) {
    %c0_i32 = arith.constant 0 : i32
    %c0_i32_0 = arith.constant 0 : i32
    %c0_i32_1 = arith.constant 0 : i32
    %c0_i32_2 = arith.constant 0 : i32
    return %arg0, %c0_i32, %arg1, %c0_i32_0, %c0_i32_1 : i32, i32, i32, i32, i32
  }
  func.func @transform_1(%arg0: i32, %arg1: i32) -> (i32, i32, i32, i32, i32) {
    %c0_i32 = arith.constant 0 : i32
    %c0_i32_0 = arith.constant 0 : i32
    %c0_i32_1 = arith.constant 0 : i32
    %c0_i32_2 = arith.constant 0 : i32
    return %arg0, %c0_i32, %arg1, %c0_i32_0, %c0_i32_1 : i32, i32, i32, i32, i32
  }
}

</mosaic_0001>

<bundles_post_ra>
// kernel: tpu_custom_call.1
= control target key start
LH: loop header
LB: loop body
LE: loop exit
PB: predicated region body
PF: predicated region fallthrough
CT: control target
= control target key end

     0   :  { %6 = vsyncpa [#allocation3], 0  ;;  %s1973_s0 = inlined_call_operand.hbm [shape: f32[2,4,4,16,16], index: 0, kind: input, shape index: {}]   ;;  %s1974_s1 = inlined_call_operand.hbm [shape: f32[2,2,4,16,16], index: 1, kind: output, shape index: {}]  }
   0x1   :  { %8 = vsyncpa [#allocation3 + $0x1], 0 }
   0x2   :  { %9 = vsyncpa [#allocation4], 0 }
   0x3   :  { %11 = vsyncpa [#allocation4 + $0x1], 0  ;;  %s1253_s6 = smov 0   ;;  %s1255_s7 = smov 0  }
   0x4   :  { %s1257_s8 = smov 0   ;;  %s1259_s9 = smov 0  }
   0x5   :  { %s1261_s10 = smov 0   ;;  %s1263_s11 = smov 0  }
   0x6 LB: > { %s972_s12 = sadd.s32 4294967295, %s1227_s11   ;;  %s973_s13 = sadd.s32 4294967294, %s1227_s11   ;;  %s1227_s11 = sphi %s1263_s11, %s17_s11   ;;  %s1223_s10 = sphi %s1261_s10, %s1990_s10   ;;  %s1219_s9 = sphi %s1259_s9, %s1989_s9   ;;  %s1215_s8 = sphi %s1257_s8, %s1988_s8   ;;  %s1211_s7 = sphi %s1255_s7, %s1987_s7   ;;  %s1207_s6 = sphi %s1253_s6, %s1986_s6  }
   0x7   : > { %s29_s14 = sadd.s32 1, %s1223_s10  ;;  %s38_s15 = sadd.s32 1, %s1215_s8 }
   0x8   : > { %p31_p0 = scmp.ge.s32.totalorder %s29_s14, 2  ;;  %p45_p1 = scmp.ne.s32.totalorder %s1215_s8, %s1211_s7 }
   0x9   : > { %p46_p2 = scmp.eq.s32.totalorder %s1227_s11, 0  ;;  %p51_p3 = scmp.ne.s32.totalorder %s1211_s7, %s1207_s6 }
   0xa   : > { %s1992_s14 = smov (%p31_p0, %s29_s14), 0  ;;  %p52_p5 = scmp.eq.s32.totalorder %s972_s12, 0 }
   0xb   : > { %p1294_p4 = por %p46_p2, %p45_p1  ;;  %s33_s17 = ssub.s32 %s1223_s10, %s1992_s14 }
   0xc   : > { %p77_p6 = scmp.eq.s32.totalorder %s972_s12, 1  ;;  %p36_p7 = scmp.eq.s32.totalorder %s33_s17, 0 }
   0xd   : > { %p1300_p8 = por %p52_p5, %p51_p3  ;;  %p83_p10 = scmp.eq.s32.totalorder %s973_s13, 1 }
   0xe   : > { %p1304_p9 = por %p77_p6, %p45_p1  ;;  %p1057_p13 = scmp.lt.s32.totalorder %s1227_s11, 2 }
   0xf   : > { %s1309_s20 = scalar_select %p36_p7, %s1215_s8, %s38_s15  }
  0x10   : > { %p1311_p11 = por %p83_p10, %p51_p3  ;;  %s103_s22 = sand.u32 1, %s1215_s8  }
  0x11   : > { %s976_s23 = sshll.u32 %s103_s22, 8  ;;  %s1043_s24 = sshll.u32 %s1223_s10, 12 }
  0x12   : > { %s116_s27 = scalar_lea.hbm %s1973_s0, %s1043_s24  ;;  %s107_s28 = scalar_lea.vmem [#allocation2], %s976_s23 }
  0x13   : > { %s117_s29 = sshll.u32 %s107_s28, 4  ;;  %p1324_p0 = pnand %p1057_p13, %p1294_p4  ;;  %s118_s29 = int_to_ptr.vmem [resolvable:$true] %s117_s29 }
  0x14   : > { %p979_p1 = scmp.ge.s32.totalorder %s1227_s11, 1  ;;  %s104_s2 = scalar_lea.sflag [#allocation3], %s103_s22 }
  0x15   : > { %p1121_p2 = pneg %p1324_p0  ;;  %s1132_s3 = scalar_lea.vmem %s118_s29, 4096 }
  0x16   : > { %p1133_p3 = scmp.ne.s32.totalorder %s118_s29, %s1132_s3  ;;  %s1229_s4 = smov [#allocation2]  }
  0x17   : > { %s1137_s5 = sshll.u32 %s1229_s4, 4  ;;  %s1138_s5 = int_to_ptr.vmem [resolvable:$false] %s1137_s5 }
  0x18   : > { %p1135_p5 = pnand %p1133_p3, %p1121_p2  ;;  %s1139_s12 = scalar_lea.vmem %s1138_s5, 8192 }
  0x19   : > { %p1140_p7 = scmp.lt.s32.totalorder %s118_s29, %s1138_s5  ;;  %p1141_p10 = scmp.lt.s32.totalorder %s1139_s12, %s1132_s3 }
  0x1a   : > { %p1136_p6 = pneg %p1135_p5 }
  0x1b   : > { %p1142_p12 = por %p1141_p10, %p1140_p7 }
  0x1d   : > { %p1143_p4 = pnand %p1142_p12, %p1136_p6 }
  0x1f   : > { %1146 = shalt.err (!%p1143_p4)
}
  0x20   : > { %s1230_s13 = smov 128   ;;  %s1231_s15 = smov 8  }
  0x21   : > { %1052 = dma.hbm_to_vmem [thread:$0]  (!%p1324_p0), %s116_s27, 4096, %s118_s29, %s104_s2, %s1230_s13, %s1230_s13, %s1231_s15  }
  0x22   : > { %p125_p13 = scmp.lt.s32.totalorder %s1227_s11, 3 }
  0x24   : > { %p126_p2 = pnand %p979_p1, %p125_p13 }
  0x25   : > { %s1337_s16 = sand.u32 (!%p126_p2), 1, %s1211_s7  }
  0x26   : > { %129 = sbr.rel (%p126_p2) target bundleno = 444 (0x1bc), region = 24  ;;  %s980_s17 = sshll.u32 (!%p126_p2), %s1337_s16, 8 }
  0x27   : > { %s132_s22 = scalar_lea.sflag (!%p126_p2), [#allocation3], %s1337_s16  ;;  %s1341_s23 = scalar_lea.vmem (!%p126_p2), [#allocation2], %s980_s17 }
  0x2b   : > { %1198 = dma.done.wait (%p1300_p8), %s132_s22, 4096  }
  0x2c   : > { %1200 = vsyncadd (%p1300_p8), %s132_s22, 4294963200  ;;  %v158_v0 = vld [vmem:[%s1341_s23 + $0x10] sm:$0xff]  ;;  %v156_v2 = vld [vmem:[%s1341_s23] sm:$0xff]  ;;  %s1232_s18 = smov 127   ;;  %s1233_s24 = smov 126   ;;  %vm392_vm0 = vcmask 4096  }
  0x2d   : > { %v984_v1 = vld [vmem:[%s1341_s23 + $0x50] sm:$0xff]  ;;  %v982_v4 = vld [vmem:[%s1341_s23 + $0x40] sm:$0xff]  ;;  %v159_v5 = vld [vmem:[%s1341_s23 + $0x18] sm:$0xff]  ;;  %s1234_s25 = smov 125   ;;  %s1235_s26 = smov 124   ;;  %vm402_vm1 = vcmask 127088  }
  0x2e   : > { %v1350_v3 = vmax.f32 %v158_v0, %v984_v1  ;;  %v985_v6 = vld [vmem:[%s1341_s23 + $0x58] sm:$0xff]  ;;  %v1355_v7 = vmax.f32 %v156_v2, %v982_v4  ;;  %v157_v8 = vld [vmem:[%s1341_s23 + $0x8] sm:$0xff]  ;;  %v160_v14 = vld [vmem:[%s1341_s23 + $0x20] sm:$0xff]  ;;  %s1236_s27 = smov 123   ;;  %s981_s28 = sshll.u32 %s1337_s16, 7  ;;  %v1237_v2 = vmov 0.0  }
  0x2f   : > { %v983_v9 = vld [vmem:[%s1341_s23 + $0x48] sm:$0xff]  ;;  %v1361_v10 = vmax.f32 %v159_v5, %v985_v6  ;;  %v986_v15 = vld [vmem:[%s1341_s23 + $0x60] sm:$0xff]  ;;  %v163_v18 = vld [vmem:[%s1341_s23 + $0x38] sm:$0xff]  ;;  %s1542_s29 = scalar_lea.vmem [#allocation5], %s981_s28  ;;  %vm293_vm2 = vcmask 1046528   ;;  %vm322_vm3 = vcmask 1045504  }
  0x30   : > { %193 = vrot.lane.b32.xlu1 %v1350_v3, %s1232_s18  ;;  %189 = vrot.lane.b32.xlu0 %v1355_v7, %s1232_s18  ;;  %v1365_v11 = vmax.f32 %v157_v8, %v983_v9  ;;  %v161_v12 = vld [vmem:[%s1341_s23 + $0x28] sm:$0xff]  ;;  %v1377_v17 = vmax.f32 %v160_v14, %v986_v15  ;;  %v989_v19 = vld [vmem:[%s1341_s23 + $0x78] sm:$0xff]  ;;  %vm351_vm4 = vcmask 1044480   ;;  %vm738_vm5 = vcmask 1043456   ;;  %s1238_s30 = smov 1   ;;  %s1239_s2 = smov 2  }
  0x31   : > { %v987_v13 = vld [vmem:[%s1341_s23 + $0x68] sm:$0xff]  ;;  %v162_v20 = vld [vmem:[%s1341_s23 + $0x30] sm:$0xff]  ;;  %v1385_v22 = vmax.f32 %v163_v18, %v989_v19  ;;  %v990_v26 = vld [vmem:[%s1341_s23 + $0x80] sm:$0xff]  ;;  %393 = vst.msk [vmem:[%s1542_s29 + $0x9] sm:$0x1f] %vm392_vm0, %v1237_v2  ;;  %vm767_vm6 = vcmask 1042432  }
  0x32   : > { %v1373_v16 = vmax.f32 %v161_v12, %v987_v13  ;;  %v988_v21 = vld [vmem:[%s1341_s23 + $0x70] sm:$0xff]  ;;  %v991_v24 = vld [vmem:[%s1341_s23 + $0x88] sm:$0xff]  ;;  %v998_v27 = vld [vmem:[%s1341_s23 + $0xc0] sm:$0xff]  ;;  %395 = vst.msk [vmem:[%s1542_s29 + $0x19] sm:$0x1f] %vm392_vm0, %v1237_v2  ;;  %vm390_vm7 = vcmask 7168  }
  0x33   : > { %v1389_v23 = vmax.f32 %v162_v20, %v988_v21  ;;  %v999_v25 = vld [vmem:[%s1341_s23 + $0xc8] sm:$0xff]  ;;  %v1405_v29 = vmax.f32 %v990_v26, %v998_v27  ;;  %v993_v30 = vld [vmem:[%s1341_s23 + $0x98] sm:$0xff]  ;;  %v992_v32 = vld [vmem:[%s1341_s23 + $0x90] sm:$0xff]  ;;  %397 = vst.msk [vmem:[%s1542_s29 + $0x29] sm:$0x1f] %vm392_vm0, %v1237_v2  ;;  %vm400_vm8 = vcmask 130160  }
  0x34   : > { %195 = vrot.lane.b32.xlu1 %v1361_v10, %s1232_s18  ;;  %191 = vrot.lane.b32.xlu0 %v1365_v11, %s1232_s18  ;;  %v1401_v28 = vmax.f32 %v991_v24, %v999_v25  ;;  %v1001_v31 = vld [vmem:[%s1341_s23 + $0xd8] sm:$0xff]  ;;  %v1000_v33 = vld [vmem:[%s1341_s23 + $0xd0] sm:$0xff]  ;;  %vm808_vm9 = vcmask 10240   ;;  %vm818_vm10 = vcmask 125032   ;;  %vm806_vm11 = vcmask 15360   ;;  %s1044_s3 = sshll.u32 %s1219_s9, 11 }
  0x35   : > { %v1413_v34 = vmax.f32 %v993_v30, %v1001_v31  ;;  %v1417_v35 = vmax.f32 %v992_v32, %v1000_v33  ;;  %v995_v36 = vld [vmem:[%s1341_s23 + $0xa8] sm:$0xff]  ;;  %v994_v38 = vld [vmem:[%s1341_s23 + $0xa0] sm:$0xff]  ;;  %v997_v42 = vld [vmem:[%s1341_s23 + $0xb8] sm:$0xff]  ;;  %399 = vst.msk [vmem:[%s1542_s29 + $0x39] sm:$0x1f] %vm392_vm0, %v1237_v2  ;;  %vm816_vm12 = vcmask 130152   ;;  %s1919_s13 = scalar_lea.hbm %s1974_s1, %s1044_s3 }
  0x36   : > { %v1003_v37 = vld [vmem:[%s1341_s23 + $0xe8] sm:$0xff]  ;;  %v1002_v39 = vld [vmem:[%s1341_s23 + $0xe0] sm:$0xff]  ;;  %v1005_v43 = vld [vmem:[%s1341_s23 + $0xf8] sm:$0xff]  ;;  %403 = vst.msk [vmem:[%s1542_s29 + $0x9] sm:$0x1f] %vm402_vm1, %v1237_v2  ;;  %vm380_vm13 = vcmask 122880  }
  0x37   : > { %v1425_v40 = vmax.f32 %v995_v36, %v1003_v37  ;;  %v1429_v41 = vmax.f32 %v994_v38, %v1002_v39  ;;  %v996_v44 = vld [vmem:[%s1341_s23 + $0xb0] sm:$0xff]  ;;  %v1437_v46 = vmax.f32 %v997_v42, %v1005_v43  ;;  %405 = vst.msk [vmem:[%s1542_s29 + $0x19] sm:$0x1f] %vm402_vm1, %v1237_v2  ;;  %407 = vst.msk [vmem:[%s1542_s29 + $0x29] sm:$0x1f] %vm402_vm1, %v1237_v2  ;;  %vm385_vm14 = vcmask 123904  }
  0x38   : > { %199 = vrot.lane.b32.xlu1 %v1373_v16, %s1232_s18  ;;  %197 = vrot.lane.b32.xlu0 %v1377_v17, %s1232_s18  ;;  %v1004_v45 = vld [vmem:[%s1341_s23 + $0xf0] sm:$0xff]  ;;  %409 = vst.msk [vmem:[%s1542_s29 + $0x39] sm:$0x1f] %vm402_vm1, %v1237_v2  ;;  %vm801_vm15 = vcmask 124928   ;;  %vm444_vm0 = vcmask 110600   ;;  %vm442_vm1 = vcmask 113672  }
  0x39   : > { %v1441_v47 = vmax.f32 %v996_v44, %v1004_v45  ;;  %391 = vst.msk [vmem:[%s1542_s29 + $0x1] sm:$0xff] %vm390_vm7, %v1237_v2  ;;  %394 = vst.msk [vmem:[%s1542_s29 + $0x11] sm:$0xff] %vm390_vm7, %v1237_v2  ;;  %s885_s4 = sshll.u32 %s1542_s29, 4  ;;  %s869_s9 = scalar_lea.sflag [#allocation4], %s1337_s16  ;;  %s1921_s4 = int_to_ptr.vmem [resolvable:$true] %s885_s4 }
  0x3a   : > { %396 = vst.msk [vmem:[%s1542_s29 + $0x21] sm:$0xff] %vm390_vm7, %v1237_v2  ;;  %398 = vst.msk [vmem:[%s1542_s29 + $0x31] sm:$0xff] %vm390_vm7, %v1237_v2  ;;  %s1147_s15 = scalar_lea.vmem %s1921_s4, 2048  ;;  %s1240_s17 = smov [#allocation5]  }
  0x3b   : > { %401 = vst.msk [vmem:[%s1542_s29 + $0x1] sm:$0xff] %vm400_vm8, %v1237_v2  ;;  %404 = vst.msk [vmem:[%s1542_s29 + $0x11] sm:$0xff] %vm400_vm8, %v1237_v2  ;;  %p1148_p8 = scmp.ne.s32.totalorder %s1921_s4, %s1147_s15  ;;  %s1151_s22 = sshll.u32 %s1240_s17, 4  ;;  %s1152_s22 = int_to_ptr.vmem [resolvable:$false] %s1151_s22 }
  0x3c   : > { %203 = vrot.lane.b32.xlu1 %v1385_v22, %s1232_s18  ;;  %201 = vrot.lane.b32.xlu0 %v1389_v23, %s1232_s18  ;;  %406 = vst.msk [vmem:[%s1542_s29 + $0x21] sm:$0xff] %vm400_vm8, %v1237_v2  ;;  %408 = vst.msk [vmem:[%s1542_s29 + $0x31] sm:$0xff] %vm400_vm8, %v1237_v2  ;;  %s1153_s23 = scalar_lea.vmem %s1152_s22, 4096  ;;  %p1154_p1 = scmp.lt.s32.totalorder %s1921_s4, %s1152_s22 }
  0x3d   : > { %1015 = vst.msk [vmem:[%s1542_s29 + $0x4a] sm:$0x7] %vm808_vm9, %v1237_v2  ;;  %1017 = vst.msk [vmem:[%s1542_s29 + $0x5a] sm:$0x7] %vm808_vm9, %v1237_v2  ;;  %p1149_p12 = pnand %p1148_p8, %p1304_p9  ;;  %p1155_p3 = scmp.lt.s32.totalorder %s1153_s23, %s1147_s15 }
  0x3e   : > { %1019 = vst.msk [vmem:[%s1542_s29 + $0x6a] sm:$0x7] %vm808_vm9, %v1237_v2  ;;  %1021 = vst.msk [vmem:[%s1542_s29 + $0x7a] sm:$0x7] %vm808_vm9, %v1237_v2 }
  0x3f   : > { %1023 = vst.msk [vmem:[%s1542_s29 + $0x4a] sm:$0x7] %vm818_vm10, %v1237_v2  ;;  %1025 = vst.msk [vmem:[%s1542_s29 + $0x5a] sm:$0x7] %vm818_vm10, %v1237_v2  ;;  %p1150_p0 = pneg %p1149_p12  ;;  %p1156_p5 = por %p1155_p3, %p1154_p1 }
  0x40   : > { %223 = vrot.lane.b32.xlu1 %v1365_v11, %s1233_s24  ;;  %221 = vrot.lane.b32.xlu0 %v1355_v7, %s1233_s24  ;;  %1027 = vst.msk [vmem:[%s1542_s29 + $0x6a] sm:$0x7] %vm818_vm10, %v1237_v2  ;;  %1029 = vst.msk [vmem:[%s1542_s29 + $0x7a] sm:$0x7] %vm818_vm10, %v1237_v2 }
  0x41   : > { %1014 = vst.msk [vmem:[%s1542_s29 + $0x42] sm:$0xff] %vm806_vm11, %v1237_v2  ;;  %1016 = vst.msk [vmem:[%s1542_s29 + $0x52] sm:$0xff] %vm806_vm11, %v1237_v2  ;;  %p1157_p6 = pnand %p1156_p5, %p1150_p0 }
  0x42   : > { %1018 = vst.msk [vmem:[%s1542_s29 + $0x62] sm:$0xff] %vm806_vm11, %v1237_v2  ;;  %1020 = vst.msk [vmem:[%s1542_s29 + $0x72] sm:$0xff] %vm806_vm11, %v1237_v2 }
  0x43   : > { %1022 = vst.msk [vmem:[%s1542_s29 + $0x42] sm:$0xff] %vm816_vm12, %v1237_v2  ;;  %1024 = vst.msk [vmem:[%s1542_s29 + $0x52] sm:$0xff] %vm816_vm12, %v1237_v2 }
  0x44   : > { %488 = vrot.lane.b32.xlu1 %v1401_v28, %s1232_s18  ;;  %486 = vrot.lane.b32.xlu0 %v1405_v29, %s1232_s18  ;;  %1026 = vst.msk [vmem:[%s1542_s29 + $0x62] sm:$0xff] %vm816_vm12, %v1237_v2  ;;  %1028 = vst.msk [vmem:[%s1542_s29 + $0x72] sm:$0xff] %vm816_vm12, %v1237_v2 }
  0x45   : > { %381 = vst.msk [vmem:[%s1542_s29] sm:$0x1] %vm380_vm13, %v1237_v2  ;;  %382 = vst.msk [vmem:[%s1542_s29 + $0x10] sm:$0x1] %vm380_vm13, %v1237_v2 }
  0x46   : > { %383 = vst.msk [vmem:[%s1542_s29 + $0x20] sm:$0x1] %vm380_vm13, %v1237_v2  ;;  %384 = vst.msk [vmem:[%s1542_s29 + $0x30] sm:$0x1] %vm380_vm13, %v1237_v2 }
  0x47   : > { %386 = vst.msk [vmem:[%s1542_s29 + $0xe] sm:$0x3] %vm385_vm14, %v1237_v2  ;;  %387 = vst.msk [vmem:[%s1542_s29 + $0x1e] sm:$0x3] %vm385_vm14, %v1237_v2 }
  0x48   : > { %492 = vrot.lane.b32.xlu1 %v1413_v34, %s1232_s18  ;;  %490 = vrot.lane.b32.xlu0 %v1417_v35, %s1232_s18  ;;  %388 = vst.msk [vmem:[%s1542_s29 + $0x2e] sm:$0x3] %vm385_vm14, %v1237_v2  ;;  %389 = vst.msk [vmem:[%s1542_s29 + $0x3e] sm:$0x3] %vm385_vm14, %v1237_v2 }
  0x49   : > { %1006 = vst.msk [vmem:[%s1542_s29 + $0x40] sm:$0x3] %vm385_vm14, %v1237_v2  ;;  %1007 = vst.msk [vmem:[%s1542_s29 + $0x50] sm:$0x3] %vm385_vm14, %v1237_v2 }
  0x4a   : > { %1008 = vst.msk [vmem:[%s1542_s29 + $0x60] sm:$0x3] %vm385_vm14, %v1237_v2  ;;  %1009 = vst.msk [vmem:[%s1542_s29 + $0x70] sm:$0x3] %vm385_vm14, %v1237_v2 }
  0x4b   : > { %1010 = vst.msk [vmem:[%s1542_s29 + $0x4d] sm:$0x7] %vm801_vm15, %v1237_v2  ;;  %1011 = vst.msk [vmem:[%s1542_s29 + $0x5d] sm:$0x7] %vm801_vm15, %v1237_v2 }
  0x4c   : > { %496 = vrot.lane.b32.xlu1 %v1425_v40, %s1232_s18  ;;  %494 = vrot.lane.b32.xlu0 %v1429_v41, %s1232_s18  ;;  %1012 = vst.msk [vmem:[%s1542_s29 + $0x6d] sm:$0x7] %vm801_vm15, %v1237_v2  ;;  %1013 = vst.msk [vmem:[%s1542_s29 + $0x7d] sm:$0x7] %vm801_vm15, %v1237_v2 }
  0x50   : > { %500 = vrot.lane.b32.xlu1 %v1437_v46, %s1232_s18  ;;  %498 = vrot.lane.b32.xlu0 %v1441_v47, %s1232_s18 }
  0x54   : > { %520 = vrot.lane.b32.xlu1 %v1401_v28, %s1233_s24  ;;  %518 = vrot.lane.b32.xlu0 %v1405_v29, %s1233_s24 }
  0x58   : > { %524 = vrot.lane.b32.xlu1 %v1413_v34, %s1233_s24  ;;  %522 = vrot.lane.b32.xlu0 %v1417_v35, %s1233_s24 }
  0x5c   : > { %528 = vrot.lane.b32.xlu1 %v1425_v40, %s1233_s24  ;;  %526 = vrot.lane.b32.xlu0 %v1429_v41, %s1233_s24 }
  0x60   : > { %532 = vrot.lane.b32.xlu1 %v1437_v46, %s1233_s24  ;;  %530 = vrot.lane.b32.xlu0 %v1441_v47, %s1233_s24 }
  0x64   : > { %552 = vrot.lane.b32.xlu1 %v1401_v28, %s1234_s25  ;;  %550 = vrot.lane.b32.xlu0 %v1405_v29, %s1234_s25 }
  0x68   : > { %556 = vrot.lane.b32.xlu1 %v1413_v34, %s1234_s25  ;;  %554 = vrot.lane.b32.xlu0 %v1417_v35, %s1234_s25 }
  0x6c   : > { %560 = vrot.lane.b32.xlu1 %v1425_v40, %s1234_s25  ;;  %558 = vrot.lane.b32.xlu0 %v1429_v41, %s1234_s25 }
  0x70   : > { %564 = vrot.lane.b32.xlu1 %v1437_v46, %s1234_s25  ;;  %562 = vrot.lane.b32.xlu0 %v1441_v47, %s1234_s25 }
  0x74   : > { %584 = vrot.lane.b32.xlu1 %v1401_v28, %s1235_s26  ;;  %582 = vrot.lane.b32.xlu0 %v1405_v29, %s1235_s26 }
  0x78   : > { %588 = vrot.lane.b32.xlu1 %v1413_v34, %s1235_s26  ;;  %586 = vrot.lane.b32.xlu0 %v1417_v35, %s1235_s26 }
  0x7c   : > { %592 = vrot.lane.b32.xlu1 %v1425_v40, %s1235_s26  ;;  %590 = vrot.lane.b32.xlu0 %v1429_v41, %s1235_s26 }
  0x80   : > { %596 = vrot.lane.b32.xlu1 %v1437_v46, %s1235_s26  ;;  %594 = vrot.lane.b32.xlu0 %v1441_v47, %s1235_s26 }
  0x84   : > { %616 = vrot.lane.b32.xlu1 %v1401_v28, %s1236_s27  ;;  %614 = vrot.lane.b32.xlu0 %v1405_v29, %s1236_s27 }
  0x88   : > { %620 = vrot.lane.b32.xlu1 %v1413_v34, %s1236_s27  ;;  %618 = vrot.lane.b32.xlu0 %v1417_v35, %s1236_s27 }
  0x8c   : > { %624 = vrot.lane.b32.xlu1 %v1425_v40, %s1236_s27  ;;  %622 = vrot.lane.b32.xlu0 %v1429_v41, %s1236_s27 }
  0x90   : > { %628 = vrot.lane.b32.xlu1 %v1437_v46, %s1236_s27  ;;  %626 = vrot.lane.b32.xlu0 %v1441_v47, %s1236_s27 }
  0x94   : > { %227 = vrot.lane.b32.xlu1 %v1361_v10, %s1233_s24  ;;  %225 = vrot.lane.b32.xlu0 %v1350_v3, %s1233_s24 }
  0x98   : > { %231 = vrot.lane.b32.xlu1 %v1373_v16, %s1233_s24  ;;  %229 = vrot.lane.b32.xlu0 %v1377_v17, %s1233_s24 }
  0x9c   : > { %235 = vrot.lane.b32.xlu1 %v1385_v22, %s1233_s24  ;;  %233 = vrot.lane.b32.xlu0 %v1389_v23, %s1233_s24 }
  0xa0   : > { %255 = vrot.lane.b32.xlu1 %v1365_v11, %s1234_s25  ;;  %253 = vrot.lane.b32.xlu0 %v1355_v7, %s1234_s25 }
  0xa2   : > { %v1511_v48 = vpop.permute.xlu1 %193  ;;  %v190_v49 = vpop.permute.xlu0 %189 }
  0xa3   : > { %v213_v57 = vmax.f32 %v1355_v7, %v190_v49 }
  0xa4   : > { %259 = vrot.lane.b32.xlu1 %v1361_v10, %s1234_s25  ;;  %257 = vrot.lane.b32.xlu0 %v1350_v3, %s1234_s25 }
  0xa6   : > { %v1517_v50 = vpop.permute.xlu1 %195  ;;  %v192_v51 = vpop.permute.xlu0 %191 }
  0xa7   : > { %v214_v56 = vmax.f32 %v1365_v11, %v192_v51 }
  0xa8   : > { %263 = vrot.lane.b32.xlu1 %v1373_v16, %s1234_s25  ;;  %261 = vrot.lane.b32.xlu0 %v1377_v17, %s1234_s25 }
  0xaa   : > { %v1523_v52 = vpop.permute.xlu1 %199  ;;  %v1525_v53 = vpop.permute.xlu0 %197 }
  0xac   : > { %267 = vrot.lane.b32.xlu1 %v1385_v22, %s1234_s25  ;;  %265 = vrot.lane.b32.xlu0 %v1389_v23, %s1234_s25 }
  0xae   : > { %v1531_v54 = vpop.permute.xlu1 %203  ;;  %v1533_v55 = vpop.permute.xlu0 %201 }
  0xb2   : > { %v224_v58 = vpop.permute.xlu1 %223  ;;  %v222_v60 = vpop.permute.xlu0 %221 }
  0xb3   : > { %v1537_v59 = vmax.f32 %v214_v56, %v224_v58  ;;  %v1539_v61 = vmax.f32 %v213_v57, %v222_v60 }
  0xb6   : > { %v489_v62 = vpop.permute.xlu1 %488  ;;  %v487_v63 = vpop.permute.xlu0 %486 }
  0xb7   : > { %v511_v8 = vmax.f32 %v1401_v28, %v489_v62  ;;  %v510_v9 = vmax.f32 %v1405_v29, %v487_v63 }
  0xba   : > { %v493_v0 = vpop.permute.xlu1 %492  ;;  %v491_v1 = vpop.permute.xlu0 %490 }
  0xbb   : > { %v513_v15 = vmax.f32 %v1413_v34, %v493_v0  ;;  %v512_v18 = vmax.f32 %v1417_v35, %v491_v1 }
  0xbe   : > { %v497_v4 = vpop.permute.xlu1 %496  ;;  %v495_v5 = vpop.permute.xlu0 %494 }
  0xbf   : > { %v515_v25 = vmax.f32 %v1425_v40, %v497_v4  ;;  %v514_v26 = vmax.f32 %v1429_v41, %v495_v5 }
  0xc2   : > { %v501_v6 = vpop.permute.xlu1 %500  ;;  %v499_v7 = vpop.permute.xlu0 %498 }
  0xc3   : > { %v517_v31 = vmax.f32 %v1437_v46, %v501_v6  ;;  %v516_v32 = vmax.f32 %v1441_v47, %v499_v7 }
  0xc6   : > { %v521_v11 = vpop.permute.xlu1 %520  ;;  %v519_v13 = vpop.permute.xlu0 %518 }
  0xc7   : > { %v543_v12 = vmax.f32 %v511_v8, %v521_v11  ;;  %v542_v14 = vmax.f32 %v510_v9, %v519_v13 }
  0xca   : > { %v525_v19 = vpop.permute.xlu1 %524  ;;  %v523_v21 = vpop.permute.xlu0 %522 }
  0xcb   : > { %v545_v20 = vmax.f32 %v513_v15, %v525_v19  ;;  %v544_v24 = vmax.f32 %v512_v18, %v523_v21 }
  0xce   : > { %v529_v27 = vpop.permute.xlu1 %528  ;;  %v527_v29 = vpop.permute.xlu0 %526 }
  0xcf   : > { %v1566_v28 = vmax.f32 %v515_v25, %v529_v27  ;;  %v1568_v30 = vmax.f32 %v514_v26, %v527_v29 }
  0xd2   : > { %v533_v33 = vpop.permute.xlu1 %532  ;;  %v531_v35 = vpop.permute.xlu0 %530 }
  0xd3   : > { %v1572_v34 = vmax.f32 %v517_v31, %v533_v33  ;;  %v1574_v36 = vmax.f32 %v516_v32, %v531_v35 }
  0xd6   : > { %v553_v37 = vpop.permute.xlu1 %552  ;;  %v551_v39 = vpop.permute.xlu0 %550 }
  0xd7   : > { %v575_v38 = vmax.f32 %v543_v12, %v553_v37  ;;  %v574_v40 = vmax.f32 %v542_v14, %v551_v39 }
  0xda   : > { %v557_v41 = vpop.permute.xlu1 %556  ;;  %v555_v43 = vpop.permute.xlu0 %554 }
  0xdb   : > { %v577_v42 = vmax.f32 %v545_v20, %v557_v41  ;;  %v576_v44 = vmax.f32 %v544_v24, %v555_v43 }
  0xde   : > { %v561_v45 = vpop.permute.xlu1 %560  ;;  %v559_v46 = vpop.permute.xlu0 %558 }
  0xdf   : > { %v579_v49 = vmax.f32 %v1566_v28, %v561_v45  ;;  %v578_v47 = vmax.f32 %v1568_v30, %v559_v46 }
  0xe2   : > { %v1578_v51 = vpop.permute.xlu1 %564  ;;  %v1582_v57 = vpop.permute.xlu0 %562 }
  0xe3   : > { %v581_v56 = vmax.f32 %v1572_v34, %v1578_v51  ;;  %v580_v58 = vmax.f32 %v1574_v36, %v1582_v57  ;;  %v218_v51 = vmax.f32 %v1373_v16, %v1523_v52 }
  0xe6   : > { %v585_v60 = vpop.permute.xlu1 %584  ;;  %v583_v62 = vpop.permute.xlu0 %582 }
  0xe7   : > { %v607_v7 = vmax.f32 %v575_v38, %v585_v60  ;;  %v606_v8 = vmax.f32 %v574_v40, %v583_v62 }
  0xea   : > { %v589_v63 = vpop.permute.xlu1 %588  ;;  %v587_v0 = vpop.permute.xlu0 %586 }
  0xeb   : > { %v609_v13 = vmax.f32 %v577_v42, %v589_v63  ;;  %v608_v14 = vmax.f32 %v576_v44, %v587_v0  ;;  %v215_v42 = vmax.f32 %v1350_v3, %v1511_v48 }
  0xee   : > { %v593_v1 = vpop.permute.xlu1 %592  ;;  %v591_v4 = vpop.permute.xlu0 %590 }
  0xef   : > { %v611_v46 = vmax.f32 %v579_v49, %v593_v1  ;;  %v610_v60 = vmax.f32 %v578_v47, %v591_v4  ;;  %v216_v4 = vmax.f32 %v1361_v10, %v1517_v50 }
  0xf2   : > { %v597_v5 = vpop.permute.xlu1 %596  ;;  %v1586_v6 = vpop.permute.xlu0 %594 }
  0xf6   : > { %v617_v9 = vpop.permute.xlu1 %616  ;;  %v615_v12 = vpop.permute.xlu0 %614 }
  0xf7   : > { %v1588_v11 = vmax.f32 %v607_v7, %v617_v9  ;;  %v638_v15 = vmax.f32 %v606_v8, %v615_v12 }
  0xf9   : > { %v655_v18 = vrot.slane %v1588_v11, 1  ;;  %v683_v19 = vrot.slane %v1588_v11, 2  ;;  %v711_v20 = vrot.slane %v1588_v11, 3  ;;  %v740_v21 = vrot.slane %v1588_v11, 4 }
  0xfa   : > { %v621_v24 = vpop.permute.xlu1 %620  ;;  %v769_v25 = vrot.slane %v1588_v11, 5  ;;  %v654_v26 = vrot.slane %v638_v15, 1  ;;  %v682_v27 = vrot.slane %v638_v15, 2  ;;  %v710_v28 = vrot.slane %v638_v15, 3  ;;  %v619_v30 = vpop.permute.xlu0 %618 }
  0xfb   : > { %v1595_v29 = vmax.f32 %v609_v13, %v621_v24  ;;  %v739_v31 = vrot.slane %v638_v15, 4  ;;  %v768_v32 = vrot.slane %v638_v15, 5  ;;  %v640_v33 = vmax.f32 %v608_v14, %v619_v30 }
  0xfc   : > { %v656_v35 = vsel %vm293_vm2, %v654_v26, %v655_v18  ;;  %v684_v37 = vsel %vm322_vm3, %v682_v27, %v683_v19  ;;  %v712_v38 = vsel %vm351_vm4, %v710_v28, %v711_v20  ;;  %v675_v63 = vmax.f32 %v1588_v11, %v655_v18 }
  0xfd   : > { %v674_v39 = vmax.f32 %v638_v15, %v656_v35  ;;  %v741_v40 = vsel %vm738_vm5, %v739_v31, %v740_v21  ;;  %v1606_v41 = vsel %vm767_vm6, %v768_v32, %v769_v25  ;;  %v658_v44 = vrot.slane %v1595_v29, 1 }
  0xfe   : > { %v625_v43 = vpop.permute.xlu1 %624  ;;  %v686_v45 = vrot.slane %v1595_v29, 2  ;;  %v623_v62 = vpop.permute.xlu0 %622  ;;  %v714_v7 = vrot.slane %v1595_v29, 3  ;;  %v743_v8 = vrot.slane %v1595_v29, 4  ;;  %v657_v9 = vrot.slane %v640_v33, 1 }
  0xff   : > { %v702_v0 = vmax.f32 %v674_v39, %v684_v37  ;;  %v685_v12 = vrot.slane %v640_v33, 2  ;;  %v772_v14 = vrot.slane %v1595_v29, 5  ;;  %v713_v15 = vrot.slane %v640_v33, 3 }
 0x100   : > { %v742_v24 = vrot.slane %v640_v33, 4  ;;  %v1616_v26 = vmax.f32 %v611_v46, %v625_v43  ;;  %v659_v49 = vsel %vm293_vm2, %v657_v9, %v658_v44  ;;  %v771_v1 = vrot.slane %v640_v33, 5 }
 0x101   : > { %v730_v13 = vmax.f32 %v702_v0, %v712_v38  ;;  %v687_v47 = vsel %vm322_vm3, %v685_v12, %v686_v45  ;;  %v703_v28 = vmax.f32 %v675_v63, %v683_v19  ;;  %v676_v31 = vmax.f32 %v640_v33, %v659_v49 }
 0x102   : > { %v629_v27 = vpop.permute.xlu1 %628  ;;  %v627_v18 = vpop.permute.xlu0 %626  ;;  %v613_v32 = vmax.f32 %v581_v56, %v597_v5  ;;  %v642_v35 = vmax.f32 %v610_v60, %v623_v62  ;;  %v715_v37 = vsel %vm351_vm4, %v713_v15, %v714_v7  ;;  %v744_v38 = vsel %vm738_vm5, %v742_v24, %v743_v8 }
 0x103   : > { %v1622_v30 = vmax.f32 %v730_v13, %v741_v40  ;;  %v677_v50 = vmax.f32 %v1595_v29, %v658_v44  ;;  %v704_v19 = vmax.f32 %v676_v31, %v687_v47  ;;  %v1639_v34 = vsel %vm767_vm6, %v771_v1, %v772_v14 }
 0x104   : > { %v612_v56 = vmax.f32 %v580_v58, %v1586_v6  ;;  %v661_v33 = vrot.slane %v1616_v26, 1  ;;  %v689_v39 = vrot.slane %v1616_v26, 2  ;;  %v1649_v40 = vmax.f32 %v613_v32, %v629_v27 }
 0x105   : > { %v788_v10 = vmax.f32 %v1622_v30, %v1606_v41  ;;  %v731_v44 = vmax.f32 %v703_v28, %v711_v20  ;;  %v732_v46 = vmax.f32 %v704_v19, %v715_v37  ;;  %v717_v60 = vrot.slane %v1616_v26, 3 }
 0x106   : > { %v228_v5 = vpop.permute.xlu1 %227  ;;  %v226_v43 = vpop.permute.xlu0 %225  ;;  %v746_v62 = vrot.slane %v1616_v26, 4  ;;  %v775_v16 = vrot.slane %v1616_v26, 5  ;;  %v660_v52 = vrot.slane %v642_v35, 1  ;;  %v688_v63 = vrot.slane %v642_v35, 2 }
 0x107   : > { %v705_v36 = vmax.f32 %v677_v50, %v686_v45  ;;  %v1654_v57 = vmax.f32 %v732_v46, %v744_v38  ;;  %v716_v58 = vrot.slane %v642_v35, 3  ;;  %v745_v6 = vrot.slane %v642_v35, 4 }
 0x108   : > { %v644_v0 = vmax.f32 %v612_v56, %v627_v18  ;;  %v662_v12 = vsel %vm293_vm2, %v660_v52, %v661_v33  ;;  %v690_v20 = vsel %vm322_vm3, %v688_v63, %v689_v39  ;;  %v774_v13 = vrot.slane %v642_v35, 5 }
 0x109   : > { %v217_v15 = vmax.f32 %v1377_v17, %v1525_v53  ;;  %v220_v24 = vmax.f32 %v1385_v22, %v1531_v54  ;;  %v790_v45 = vmax.f32 %v1654_v57, %v1639_v34  ;;  %v678_v49 = vmax.f32 %v642_v35, %v662_v12 }
 0x10a   : > { %v232_v9 = vpop.permute.xlu1 %231  ;;  %v230_v27 = vpop.permute.xlu0 %229  ;;  %v718_v47 = vsel %vm351_vm4, %v716_v58, %v717_v60  ;;  %v747_v1 = vsel %vm738_vm5, %v745_v6, %v746_v62  ;;  %v1673_v17 = vsel %vm767_vm6, %v774_v13, %v775_v16  ;;  %v664_v22 = vrot.slane %v1649_v40, 1 }
 0x10b   : > { %v219_v53 = vmax.f32 %v1389_v23, %v1533_v55  ;;  %v1680_v54 = vmax.f32 %v731_v44, %v740_v21  ;;  %v679_v18 = vmax.f32 %v1616_v26, %v661_v33  ;;  %v706_v28 = vmax.f32 %v678_v49, %v690_v20 }
 0x10c   : > { %v1685_v32 = vmax.f32 %v705_v36, %v714_v7  ;;  %v692_v35 = vrot.slane %v1649_v40, 2  ;;  %v720_v37 = vrot.slane %v1649_v40, 3  ;;  %v663_v38 = vrot.slane %v644_v0, 1 }
 0x10d   : > { %v248_v50 = vmax.f32 %v216_v4, %v228_v5  ;;  %v247_v23 = vmax.f32 %v215_v42, %v226_v43  ;;  %v734_v21 = vmax.f32 %v706_v28, %v718_v47  ;;  %v1976_v19 = vrot.slane %v1649_v40, 4 }
 0x10e   : > { %v236_v31 = vpop.permute.xlu1 %235  ;;  %v234_v55 = vpop.permute.xlu0 %233  ;;  %v1975_v56 = vrot.slane %v1649_v40, 5  ;;  %v665_v7 = vsel %vm293_vm2, %v663_v38, %v664_v22  ;;  %v691_v33 = vrot.slane %v644_v0, 2  ;;  %v719_v44 = vrot.slane %v644_v0, 3 }
 0x10f   : > { %v1697_v46 = vmax.f32 %v679_v18, %v689_v39  ;;  %v1699_v4 = vmax.f32 %v734_v21, %v747_v1  ;;  %v680_v3 = vmax.f32 %v644_v0, %v665_v7  ;;  %v748_v48 = vrot.slane %v644_v0, 4 }
 0x110   : > { %v693_v5 = vsel %vm322_vm3, %v691_v33, %v692_v35  ;;  %v1707_v43 = vsel %vm351_vm4, %v719_v44, %v720_v37  ;;  %v777_v52 = vrot.slane %v644_v0, 5  ;;  %v250_v39 = vmax.f32 %v218_v51, %v232_v9 }
 0x111   : > { %v1712_v6 = vmax.f32 %v680_v3, %v693_v5  ;;  %v1726_v51 = vsel %vm738_vm5, %v748_v48, %v1976_v19  ;;  %v249_v9 = vmax.f32 %v217_v15, %v230_v27  ;;  %v252_v28 = vmax.f32 %v220_v24, %v236_v31 }
 0x112   : > { %v256_v42 = vpop.permute.xlu1 %255  ;;  %v254_v36 = vpop.permute.xlu0 %253  ;;  %v1731_v0 = vsel %vm767_vm6, %v777_v52, %v1975_v56  ;;  %v251_v15 = vmax.f32 %v219_v53, %v234_v55  ;;  %v1982_v41 = vrot.slane %v1649_v40, 4  ;;  %v1983_v2 = vmax.f32 %v1699_v4, %v1673_v17 }
 0x113   : > { %v278_v63 = vmax.f32 %v1537_v59, %v256_v42  ;;  %v277_v59 = vmax.f32 %v1539_v61, %v254_v36  ;;  %v736_v18 = vmax.f32 %v1712_v6, %v1707_v43  ;;  %v681_v6 = vmax.f32 %v1649_v40, %v664_v22 }
 0x114   : > { %v1984_v30 = vrot.slane %v1649_v40, 5 }
 0x115   : > { %v295_v12 = vrot.slane %v278_v63, 1  ;;  %v324_v20 = vrot.slane %v278_v63, 2  ;;  %v353_v13 = vrot.slane %v278_v63, 3  ;;  %v294_v61 = vrot.slane %v277_v59, 1 }
 0x116   : > { %v323_v49 = vrot.slane %v277_v59, 2  ;;  %v352_v47 = vrot.slane %v277_v59, 3  ;;  %v260_v1 = vpop.permute.xlu1 %259  ;;  %v258_v38 = vpop.permute.xlu0 %257 }
 0x117   : > { %v280_v27 = vmax.f32 %v248_v50, %v260_v1  ;;  %v315_v21 = vmax.f32 %v278_v63, %v295_v12  ;;  %v279_v7 = vmax.f32 %v247_v23, %v258_v38  ;;  %v296_v33 = vsel %vm293_vm2, %v294_v61, %v295_v12 }
 0x118   : > { %v325_v44 = vsel %vm322_vm3, %v323_v49, %v324_v20  ;;  %v354_v3 = vsel %vm351_vm4, %v352_v47, %v353_v13  ;;  %v314_v5 = vmax.f32 %v277_v59, %v296_v33 }
 0x119   : > { %v298_v48 = vrot.slane %v280_v27, 1  ;;  %v344_v42 = vmax.f32 %v315_v21, %v324_v20  ;;  %v327_v52 = vrot.slane %v280_v27, 2  ;;  %v297_v36 = vrot.slane %v279_v7, 1 }
 0x11a   : > { %v326_v56 = vrot.slane %v279_v7, 2  ;;  %v355_v58 = vrot.slane %v279_v7, 3  ;;  %v264_v19 = vpop.permute.xlu1 %263  ;;  %v356_v24 = vrot.slane %v280_v27, 3  ;;  %v262_v31 = vpop.permute.xlu0 %261  ;;  %v343_v55 = vmax.f32 %v314_v5, %v325_v44 }
 0x11b   : > { %v282_v53 = vmax.f32 %v250_v39, %v264_v19  ;;  %v373_v50 = vmax.f32 %v344_v42, %v353_v13  ;;  %v317_v23 = vmax.f32 %v280_v27, %v298_v48  ;;  %v281_v63 = vmax.f32 %v249_v9, %v262_v31 }
 0x11c   : > { %v299_v12 = vsel %vm293_vm2, %v297_v36, %v298_v48  ;;  %v328_v61 = vsel %vm322_vm3, %v326_v56, %v327_v52  ;;  %v357_v49 = vsel %vm351_vm4, %v355_v58, %v356_v24  ;;  %v372_v59 = vmax.f32 %v343_v55, %v354_v3 }
 0x11d   : > { %v301_v20 = vrot.slane %v282_v53, 1  ;;  %420 = vrot.lane.b32.xlu1 %v373_v50, %s1238_s30  ;;  %v346_v47 = vmax.f32 %v317_v23, %v327_v52  ;;  %v316_v1 = vmax.f32 %v279_v7, %v299_v12  ;;  %v300_v38 = vrot.slane %v281_v63, 1 }
 0x11e   : > { %v329_v19 = vrot.slane %v281_v63, 2  ;;  %v358_v39 = vrot.slane %v281_v63, 3  ;;  %v268_v13 = vpop.permute.xlu1 %267  ;;  %v330_v21 = vrot.slane %v282_v53, 2  ;;  %418 = vrot.lane.b32.xlu0 %v372_v59, %s1238_s30  ;;  %v266_v9 = vpop.permute.xlu0 %265  ;;  %v359_v48 = vrot.slane %v282_v53, 3 }
 0x11f   : > { %v284_v27 = vmax.f32 %v252_v28, %v268_v13  ;;  %v375_v33 = vmax.f32 %v346_v47, %v356_v24  ;;  %v345_v56 = vmax.f32 %v316_v1, %v328_v61  ;;  %v319_v44 = vmax.f32 %v282_v53, %v301_v20 }
 0x120   : > { %v283_v58 = vmax.f32 %v251_v15, %v266_v9  ;;  %v302_v42 = vsel %vm293_vm2, %v300_v38, %v301_v20  ;;  %v331_v3 = vsel %vm322_vm3, %v329_v19, %v330_v21  ;;  %v360_v24 = vsel %vm351_vm4, %v358_v39, %v359_v48 }
 0x121   : > { %v304_v5 = vrot.slane %v284_v27, 1  ;;  %424 = vrot.lane.b32.xlu1 %v375_v33, %s1238_s30  ;;  %v374_v7 = vmax.f32 %v345_v56, %v357_v49  ;;  %v348_v52 = vmax.f32 %v319_v44, %v330_v21  ;;  %v318_v36 = vmax.f32 %v281_v63, %v302_v42 }
 0x122   : > { %v303_v31 = vrot.slane %v283_v58, 1  ;;  %v332_v28 = vrot.slane %v283_v58, 2  ;;  %v361_v50 = vrot.slane %v283_v58, 3  ;;  %v333_v23 = vrot.slane %v284_v27, 2 }
 0x123   : > { %422 = vrot.lane.b32.xlu0 %v374_v7, %s1238_s30  ;;  %v377_v15 = vmax.f32 %v348_v52, %v359_v48  ;;  %v347_v53 = vmax.f32 %v318_v36, %v331_v3  ;;  %v321_v55 = vmax.f32 %v284_v27, %v304_v5  ;;  %v362_v12 = vrot.slane %v284_v27, 3 }
 0x124   : > { %v305_v61 = vsel %vm293_vm2, %v303_v31, %v304_v5  ;;  %v1761_v63 = vmax.f32 %v736_v18, %v1726_v51  ;;  %v334_v47 = vsel %vm322_vm3, %v332_v28, %v333_v23  ;;  %v762_v38 = vmax.f32 %v1685_v32, %v743_v8 }
 0x125   : > { %428 = vrot.lane.b32.xlu1 %v377_v15, %s1238_s30  ;;  %v376_v49 = vmax.f32 %v347_v53, %v360_v24  ;;  %v350_v20 = vmax.f32 %v321_v55, %v333_v23  ;;  %v320_v59 = vmax.f32 %v283_v58, %v305_v61  ;;  %v363_v43 = vsel %vm351_vm4, %v361_v50, %v362_v12 }
 0x126   : > { %v794_v51 = vmax.f32 %v1761_v63, %v1731_v0  ;;  %v789_v0 = vmax.f32 %v1680_v54, %v769_v25  ;;  %v735_v19 = vmax.f32 %v1697_v46, %v717_v60  ;;  %v709_v39 = vmax.f32 %v681_v6, %v692_v35 }
 0x127   : > { %426 = vrot.lane.b32.xlu0 %v376_v49, %s1238_s30  ;;  %v379_v18 = vmax.f32 %v350_v20, %v362_v12  ;;  %v349_v1 = vmax.f32 %v320_v59, %v334_v47  ;;  %v791_v11 = vmax.f32 %v762_v38, %v772_v14  ;;  %vm860_vm2 = vcmask 100368  }
 0x128   : > { %v764_v25 = vmax.f32 %v735_v19, %v746_v62  ;;  %v737_v8 = vmax.f32 %v709_v39, %v720_v37  ;;  %vm858_vm3 = vcmask 105488  }
 0x129   : > { %432 = vrot.lane.b32.xlu1 %v379_v18, %s1238_s30  ;;  %v378_v22 = vmax.f32 %v349_v1, %v363_v43 }
 0x12a   : > { %v793_v29 = vmax.f32 %v764_v25, %v775_v16  ;;  %v766_v14 = vmax.f32 %v737_v8, %v1982_v41 }
 0x12b   : > { %430 = vrot.lane.b32.xlu0 %v378_v22, %s1238_s30 }
 0x12d   : > { %836 = vrot.lane.b32.xlu1 %v789_v0, %s1239_s2 }
 0x12f   : > { %834 = vrot.lane.b32.xlu0 %v788_v10, %s1239_s2  ;;  %v795_v10 = vmax.f32 %v766_v14, %v1984_v30 }
 0x131   : > { %840 = vrot.lane.b32.xlu1 %v791_v11, %s1239_s2 }
 0x133   : > { %838 = vrot.lane.b32.xlu0 %v790_v45, %s1239_s2 }
 0x135   : > { %844 = vrot.lane.b32.xlu1 %v793_v29, %s1239_s2 }
 0x137   : > { %842 = vrot.lane.b32.xlu0 %v1983_v2, %s1239_s2 }
 0x139   : > { %848 = vrot.lane.b32.xlu1 %v795_v10, %s1239_s2 }
 0x13b   : > { %846 = vrot.lane.b32.xlu0 %v794_v51, %s1239_s2 }
 0x18f   : > { %v421_v26 = vpop.permute.xlu1 %420 }
 0x190   : > { %445 = vst.msk [vmem:[%s1542_s29 + $0x9] sm:$0x1f] %vm444_vm0, %v421_v26  ;;  %v419_v34 = vpop.permute.xlu0 %418 }
 0x191   : > { %443 = vst.msk [vmem:[%s1542_s29 + $0x1] sm:$0xff] %vm442_vm1, %v419_v34 }
 0x193   : > { %v425_v60 = vpop.permute.xlu1 %424 }
 0x194   : > { %447 = vst.msk [vmem:[%s1542_s29 + $0x19] sm:$0x1f] %vm444_vm0, %v425_v60 }
 0x195   : > { %v423_v40 = vpop.permute.xlu0 %422 }
 0x196   : > { %446 = vst.msk [vmem:[%s1542_s29 + $0x11] sm:$0xff] %vm442_vm1, %v423_v40 }
 0x197   : > { %v429_v62 = vpop.permute.xlu1 %428 }
 0x198   : > { %449 = vst.msk [vmem:[%s1542_s29 + $0x29] sm:$0x1f] %vm444_vm0, %v429_v62 }
 0x199   : > { %v427_v16 = vpop.permute.xlu0 %426 }
 0x19a   : > { %448 = vst.msk [vmem:[%s1542_s29 + $0x21] sm:$0xff] %vm442_vm1, %v427_v16 }
 0x19b   : > { %v433_v57 = vpop.permute.xlu1 %432 }
 0x19c   : > { %451 = vst.msk [vmem:[%s1542_s29 + $0x39] sm:$0x1f] %vm444_vm0, %v433_v57 }
 0x19d   : > { %v431_v45 = vpop.permute.xlu0 %430 }
 0x19e   : > { %450 = vst.msk [vmem:[%s1542_s29 + $0x31] sm:$0xff] %vm442_vm1, %v431_v45 }
 0x19f   : > { %v837_v17 = vpop.permute.xlu1 %836 }
 0x1a0   : > { %1031 = vst.msk [vmem:[%s1542_s29 + $0x4a] sm:$0x7] %vm860_vm2, %v837_v17 }
 0x1a1   : > { %v835_v54 = vpop.permute.xlu0 %834 }
 0x1a2   : > { %1030 = vst.msk [vmem:[%s1542_s29 + $0x42] sm:$0xff] %vm858_vm3, %v835_v54 }
 0x1a3   : > { %v841_v32 = vpop.permute.xlu1 %840 }
 0x1a4   : > { %1033 = vst.msk [vmem:[%s1542_s29 + $0x5a] sm:$0x7] %vm860_vm2, %v841_v32 }
 0x1a5   : > { %v839_v35 = vpop.permute.xlu0 %838 }
 0x1a6   : > { %1032 = vst.msk [vmem:[%s1542_s29 + $0x52] sm:$0xff] %vm858_vm3, %v839_v35 }
 0x1a7   : > { %v845_v37 = vpop.permute.xlu1 %844 }
 0x1a8   : > { %1035 = vst.msk [vmem:[%s1542_s29 + $0x6a] sm:$0x7] %vm860_vm2, %v845_v37 }
 0x1a9   : > { %v843_v46 = vpop.permute.xlu0 %842 }
 0x1aa   : > { %1034 = vst.msk [vmem:[%s1542_s29 + $0x62] sm:$0xff] %vm858_vm3, %v843_v46 }
 0x1ab   : > { %v849_v4 = vpop.permute.xlu1 %848 }
 0x1ac   : > { %1037 = vst.msk [vmem:[%s1542_s29 + $0x7a] sm:$0x7] %vm860_vm2, %v849_v4 }
 0x1ad   : > { %v847_v13 = vpop.permute.xlu0 %846 }
 0x1ae   : > { %1036 = vst.msk [vmem:[%s1542_s29 + $0x72] sm:$0xff] %vm858_vm3, %v847_v13 }
 0x1af   : > { %1160 = shalt.err (!%p1157_p6)
}
 0x1b0   : > { %s1161_s18 = scalar_lea.hbm %s1919_s13, 2048  ;;  %s1165_s26 = scalar_lea.hbm %s1974_s1, 4096 }
 0x1b1   : > { %p1162_p7 = scmp.ne.s32.totalorder %s1919_s13, %s1161_s18  ;;  %p1166_p13 = scmp.lt.s32.totalorder %s1919_s13, %s1974_s1 }
 0x1b2   : > { %p1167_p2 = scmp.lt.s32.totalorder %s1165_s26, %s1161_s18 }
 0x1b3   : > { %p1163_p10 = pnand %p1162_p7, %p1304_p9 }
 0x1b4   : > { %p1168_p8 = por %p1167_p2, %p1166_p13 }
 0x1b5   : > { %p1164_p4 = pneg %p1163_p10 }
 0x1b7   : > { %p1169_p12 = pnand %p1168_p8, %p1164_p4 }
 0x1b9   : > { %1172 = shalt.err (!%p1169_p12)
}
 0x1ba   : > { %s1241_s29 = smov 128   ;;  %s1242_s30 = smov 8  }
 0x1bb   : > { %1047 = dma.vmem_to_hbm [thread:$0]  (%p1304_p9), %s1921_s4, 2048, %s1919_s13, %s869_s9, %s1241_s29, %s1241_s29, %s1242_s30  }
 0x1bc PF: > { %s900_s2 = sand.u32 1, %s1207_s6   ;;  %p1985_p0 = scmp.ge.s32.totalorder %s1227_s11, 2 }
 0x1bd   : > { %s901_s3 = scalar_lea.sflag [#allocation4], %s900_s2 }
 0x1be   : > { %p1054_p1 = pnand %p1985_p0, %p1311_p11 }
 0x1c0   : > { %p1055_p3 = pneg %p1054_p1 }
 0x1c2   : > { %1202 = dma.done.wait (%p1055_p3), %s901_s3, 2048  }
 0x1c3   : > { %1204 = vsyncadd (%p1055_p3), %s901_s3, 4294965248  ;;  %s17_s11 = sadd.s32 1, %s1227_s11   ;;  %s1986_s6 = smov %s1211_s7 }
 0x1c4   : > { %p14_p5 = scmp.ge.s32.totalorder %s17_s11, 4   ;;  %s1987_s7 = smov %s1215_s8 }
 0x1c5   : > { %s1988_s8 = smov %s1309_s20  ;;  %s1989_s9 = smov %s1223_s10 }
 0x1c6   : > { %s1990_s10 = smov %s1992_s14  ;;  %16 = sbr.rel (!%p14_p5) target bundleno = 6 (0x6), region = 73 }
 0x1cb   :  { %906 = vsyncpa [#allocation3], 1 }
 0x1cc   :  { %908 = vsyncpa [#allocation3 + $0x1], 1 }
 0x1cd   :  { %909 = vsyncpa [#allocation4], 1 }
 0x1ce   :  { %911 = vsyncpa [#allocation4 + $0x1], 1 }

</bundles_post_ra>
